<compile_context>
chip_gen: v5e
topology: v5e:2x2
jax: 0.10.0
libtpu: 0.0.40
codegen_flags: <defaults>
</compile_context>

<pallas_src>
import functools

import jax
import jax.numpy as jnp
from jax.experimental import pallas as pl
from jax.experimental.pallas import tpu as pltpu


LANE = 128


def _round_up(a: int, b: int) -> int:
    return (a + b - 1) // b * b


def make_scgc_kernel(v: float, n_clusters: int):
    v = float(v)
    inv_v = 1.0 / v
    power = (v + 1.0) / 2.0

    def kernel(x_ref, w1_ref, b1_ref, w2_ref, b2_ref, w3_ref, b3_ref,
               wz_ref, bz_ref, mu_t_ref, mu_sq_ref,
               z_ref, q_ref):
        # ---- MLP encoder: bf16 MXU matmuls, f32 accumulation, f32 bias/ReLU ----
        x = x_ref[...]                                            # bf16 [TN, n_in]
        h1 = jnp.maximum(
            jnp.dot(x, w1_ref[...], preferred_element_type=jnp.float32)
            + b1_ref[...], 0.0)
        h2 = jnp.maximum(
            jnp.dot(h1.astype(w2_ref.dtype), w2_ref[...],
                    preferred_element_type=jnp.float32) + b2_ref[...], 0.0)
        h3 = jnp.maximum(
            jnp.dot(h2.astype(w3_ref.dtype), w3_ref[...],
                    preferred_element_type=jnp.float32) + b3_ref[...], 0.0)
        # wz/bz are zero-padded to a 128-lane multiple, so padded z dims are
        # exactly 0 and the store below is an unmasked, lane-dense vst.
        z = (jnp.dot(h3.astype(wz_ref.dtype), wz_ref[...],
                     preferred_element_type=jnp.float32) + bz_ref[...])
        z_ref[...] = z                                            # [TN, nz_pad]

        # ---- Student-t soft assignment via the MXU matmul identity ----
        # dist2_ik = ||z_i||^2 + ||mu_k||^2 - 2 <z_i, mu_k>
        z_sq = jnp.sum(z * z, axis=1, keepdims=True)              # [TN, 1]
        cross = jnp.dot(z, mu_t_ref[...],
                        preferred_element_type=jnp.float32)       # [TN, K_pad]
        dist2 = jnp.maximum(z_sq + mu_sq_ref[...] - 2.0 * cross, 0.0)

        t = dist2 * inv_v
        if power == 1.0:
            # v == 1 (default): (1 + d2/v)^(-1) -- the pow is a trace-time no-op.
            q = 1.0 / (1.0 + t)
        else:
            # General v: one log + one exp on the EUP (jnp.log instead of
            # log1p for Mosaic-lowering safety; t == 0 is still exact).
            q = jnp.exp(-power * jnp.log(1.0 + t))

        # Zero out the padded cluster columns before row-normalizing.
        col = jax.lax.broadcasted_iota(jnp.int32, q.shape, dimension=1)
        q = jnp.where(col < n_clusters, q, 0.0)
        # Exact divide: keeps sum_k q[i,k] == 1 to f32 precision
        # (pl.reciprocal(approx=True) would relax this to ~1e-3).
        q = q / jnp.sum(q, axis=1, keepdims=True)
        q_ref[...] = q                                            # [TN, K_pad]

    return kernel


@functools.partial(jax.jit, static_argnames=("v", "row_tile"))
def scgc_trim_forward(x, adj, params, *, v=1.0, row_tile=256):
    """Pallas implementation of SCGC_TRIM.forward.

    Returns (x_bar, q, None, z, None, None), matching the torch module
    (x_bar is the constant 0 returned by MLP.forward; adj is unused).
    """
    del adj  # unused by the forward pass, kept for signature fidelity
    w1, b1, w2, b2, w3, b3, wz, bz, mu = params

    N, n_input = x.shape
    n_z = wz.shape[1]
    K = mu.shape[0]

    nz_pad = _round_up(n_z, LANE)
    k_pad = _round_up(K, LANE)

    # Row tiling: TN rows per grid step, weights stay VMEM-resident.
    tn = min(int(row_tile), _round_up(N, 8))
    n_pad = _round_up(N, tn)

    f32 = jnp.float32
    bf16 = jnp.bfloat16

    # bf16 matmul inputs (x + weights), f32 biases / cluster params.
    xd = jnp.pad(x.astype(f32), ((0, n_pad - N), (0, 0))).astype(bf16)
    w1d, w2d, w3d = (w.astype(bf16) for w in (w1, w2, w3))
    b1d, b2d, b3d = (b.astype(f32) for b in (b1, b2, b3))
    wzd = jnp.pad(wz.astype(f32), ((0, 0), (0, nz_pad - n_z))).astype(bf16)
    bzd = jnp.pad(bz.astype(f32), ((0, 0), (0, nz_pad - n_z)))

    mu_f32 = mu.astype(f32)
    mu_t = jnp.pad(mu_f32.T, ((0, nz_pad - n_z), (0, k_pad - K)))       # [nz_pad, K_pad]
    mu_sq = jnp.pad(jnp.sum(mu_f32 * mu_f32, axis=1)[None, :],
                    ((0, 0), (0, k_pad - K)))                           # [1, K_pad]

    def row_spec(width):
        return pl.BlockSpec((tn, width), lambda i: (i, 0))

    def resident(arr):
        # Constant block index -> fetched once, VMEM-resident across the grid.
        return pl.BlockSpec(arr.shape, lambda i: (0,) * arr.ndim)

    in_specs = [
        row_spec(n_input),
        resident(w1d), resident(b1d),
        resident(w2d), resident(b2d),
        resident(w3d), resident(b3d),
        resident(wzd), resident(bzd),
        resident(mu_t), resident(mu_sq),
    ]
    out_shapes = (
        jax.ShapeDtypeStruct((n_pad, nz_pad), f32),   # z (lane-padded)
        jax.ShapeDtypeStruct((n_pad, k_pad), f32),    # q (lane-padded)
    )
    out_specs = (row_spec(nz_pad), row_spec(k_pad))

    z_pad_out, q_pad_out = pl.pallas_call(
        make_scgc_kernel(v, K),
        out_shape=out_shapes,
        grid=(n_pad // tn,),
        in_specs=in_specs,
        out_specs=out_specs,
        compiler_params=pltpu.CompilerParams(
            # Row axis is embarrassingly parallel -> megacore sharding on v7x.
            dimension_semantics=("parallel",)),
    )(xd, w1d, b1d, w2d, b2d, w3d, b3d, wzd, bzd, mu_t, mu_sq)

    z = z_pad_out[:N, :n_z]
    q = q_pad_out[:N, :K]
    x_bar = 0  # MLP.forward returns 0 for x_bar
    return (x_bar, q, None, z, None, None)


def init_params(key, n_input, n_enc_1, n_enc_2, n_enc_3, n_z, n_clusters):
    """Deterministic synthetic parameters (shapes follow the torch module).

    # TODO(synk): the torch module loads pretrained AE weights from
    # `load_from`; here they are synthesized in-script.
    """
    def linear(key, fan_in, fan_out):
        kw, kb = jax.random.split(key)
        bound = 1.0 / jnp.sqrt(fan_in)
        # stored pre-transposed: [in, out]
        w = jax.random.uniform(kw, (fan_in, fan_out), jnp.float32, -bound, bound)
        b = jax.random.uniform(kb, (1, fan_out), jnp.float32, -bound, bound)
        return w, b

    k1, k2, k3, kz, kc = jax.random.split(key, 5)
    w1, b1 = linear(k1, n_input, n_enc_1)
    w2, b2 = linear(k2, n_enc_1, n_enc_2)
    w3, b3 = linear(k3, n_enc_2, n_enc_3)
    wz, bz = linear(kz, n_enc_3, n_z)
    # xavier_normal_ for cluster_layer [n_clusters, n_z]
    std = jnp.sqrt(2.0 / (n_clusters + n_z))
    mu = std * jax.random.normal(kc, (n_clusters, n_z), jnp.float32)
    return (w1, b1, w2, b2, w3, b3, wz, bz, mu)


def _reference_forward(x, params, v=1.0):
    """Pure-JAX reference mirroring the kernel's bf16-matmul / f32-accumulate
    numerics but using the original broadcast-subtract Student-t formula."""
    w1, b1, w2, b2, w3, b3, wz, bz, mu = params
    f32 = jnp.float32
    bf16 = jnp.bfloat16

    def mm(a, w):
        return jnp.dot(a.astype(bf16), w.astype(bf16),
                       preferred_element_type=f32)

    h1 = jax.nn.relu(mm(x, w1) + b1)
    h2 = jax.nn.relu(mm(h1, w2) + b2)
    h3 = jax.nn.relu(mm(h2, w3) + b3)
    z = mm(h3, wz) + bz
    dist2 = jnp.sum((z[:, None, :] - mu[None, :, :]) ** 2, axis=2)
    q = 1.0 / (1.0 + dist2 / v)
    q = q ** ((v + 1.0) / 2.0)
    q = q / jnp.sum(q, axis=1, keepdims=True)
    return z, q


if __name__ == "__main__":
    # Small shapes consistent with the module's forward.
    N = 8
    n_input = 32
    n_enc_1, n_enc_2, n_enc_3 = 64, 64, 32
    n_z = 16
    n_clusters = 4

    key = jax.random.PRNGKey(0)
    kx, kp, ka = jax.random.split(key, 3)
    x = jax.random.normal(kx, (N, n_input), jnp.float32)
    adj = jax.random.normal(ka, (N, N), jnp.float32)   # unused by forward
    params = init_params(kp, n_input, n_enc_1, n_enc_2, n_enc_3, n_z, n_clusters)

    # --- v = 1 (default: pow specialized away) ---
    x_bar, q, _, z, _, _ = scgc_trim_forward(x, adj, params, v=1.0)
    jax.block_until_ready((q, z))
    z_ref, q_ref = _reference_forward(x, params, v=1.0)
    assert z.shape == (N, n_z) and q.shape == (N, n_clusters)
    assert jnp.allclose(z, z_ref, atol=2e-3, rtol=2e-3)
    assert jnp.allclose(q, q_ref, atol=2e-3, rtol=2e-3)
    assert jnp.allclose(jnp.sum(q, axis=1), 1.0, atol=1e-5)

    # --- v != 1 (exercises the exp/log pow path) ---
    _, q2, _, z2, _, _ = scgc_trim_forward(x, adj, params, v=2.0)
    jax.block_until_ready((q2, z2))
    z2_ref, q2_ref = _reference_forward(x, params, v=2.0)
    assert jnp.allclose(z2, z2_ref, atol=2e-3, rtol=2e-3)
    assert jnp.allclose(q2, q2_ref, atol=2e-3, rtol=2e-3)
    assert jnp.allclose(jnp.sum(q2, axis=1), 1.0, atol=1e-5)

    print("KERNEL_OK")
</pallas_src>

<mosaic_0001>
module attributes {stable_mosaic.version = 11 : i64} {
  func.func @kernel(%arg0: i32, %arg1: memref<8x32xbf16, #tpu.memory_space<vmem>>, %arg2: memref<32x64xbf16, #tpu.memory_space<vmem>>, %arg3: memref<1x64xf32, #tpu.memory_space<vmem>>, %arg4: memref<64x64xbf16, #tpu.memory_space<vmem>>, %arg5: memref<1x64xf32, #tpu.memory_space<vmem>>, %arg6: memref<64x32xbf16, #tpu.memory_space<vmem>>, %arg7: memref<1x32xf32, #tpu.memory_space<vmem>>, %arg8: memref<32x128xbf16, #tpu.memory_space<vmem>>, %arg9: memref<1x128xf32, #tpu.memory_space<vmem>>, %arg10: memref<128x128xf32, #tpu.memory_space<vmem>>, %arg11: memref<1x128xf32, #tpu.memory_space<vmem>>, %arg12: memref<8x128xf32, #tpu.memory_space<vmem>>, %arg13: memref<8x128xf32, #tpu.memory_space<vmem>>) attributes {dimension_semantics = [#tpu.dimension_semantics<parallel>], iteration_bounds = array<i64: 1>, scalar_prefetch = 0 : i64, scratch_operands = 0 : i64, tpu.core_type = #tpu.core_type<tc>, window_params = [{transform_indices = @transform_0, window_bounds = array<i64: 8, 32>}, {pipeline_mode = #tpu.pipeline_mode<synchronous>, transform_indices = @transform_1, window_bounds = array<i64: 32, 64>}, {pipeline_mode = #tpu.pipeline_mode<synchronous>, transform_indices = @transform_2, window_bounds = array<i64: 1, 64>}, {pipeline_mode = #tpu.pipeline_mode<synchronous>, transform_indices = @transform_3, window_bounds = array<i64: 64, 64>}, {pipeline_mode = #tpu.pipeline_mode<synchronous>, transform_indices = @transform_4, window_bounds = array<i64: 1, 64>}, {pipeline_mode = #tpu.pipeline_mode<synchronous>, transform_indices = @transform_5, window_bounds = array<i64: 64, 32>}, {pipeline_mode = #tpu.pipeline_mode<synchronous>, transform_indices = @transform_6, window_bounds = array<i64: 1, 32>}, {pipeline_mode = #tpu.pipeline_mode<synchronous>, transform_indices = @transform_7, window_bounds = array<i64: 32, 128>}, {pipeline_mode = #tpu.pipeline_mode<synchronous>, transform_indices = @transform_8, window_bounds = array<i64: 1, 128>}, {pipeline_mode = #tpu.pipeline_mode<synchronous>, transform_indices = @transform_9, window_bounds = array<i64: 128, 128>}, {pipeline_mode = #tpu.pipeline_mode<synchronous>, transform_indices = @transform_10, window_bounds = array<i64: 1, 128>}, {transform_indices = @transform_11, window_bounds = array<i64: 8, 128>}, {transform_indices = @transform_12, window_bounds = array<i64: 8, 128>}]} {
    %c0 = arith.constant 0 : index
    %c0_0 = arith.constant 0 : index
    %0 = vector.load %arg1[%c0, %c0_0] : memref<8x32xbf16, #tpu.memory_space<vmem>>, vector<8x32xbf16>
    %c0_1 = arith.constant 0 : index
    %c0_2 = arith.constant 0 : index
    %1 = vector.load %arg2[%c0_1, %c0_2] : memref<32x64xbf16, #tpu.memory_space<vmem>>, vector<32x64xbf16>
    %cst = arith.constant dense<0.000000e+00> : vector<8x64xf32>
    %2 = tpu.matmul %0, %1, %cst {dimension_numbers = #tpu.dot_dimension_numbers<[1], [0], [0], [1], [0, 0, 1, 1], [], []>} : vector<8x32xbf16>, vector<32x64xbf16>, vector<8x64xf32> -> vector<8x64xf32>
    %c0_3 = arith.constant 0 : index
    %c0_4 = arith.constant 0 : index
    %3 = vector.load %arg3[%c0_3, %c0_4] : memref<1x64xf32, #tpu.memory_space<vmem>>, vector<1x64xf32>
    %4 = vector.broadcast %3 : vector<1x64xf32> to vector<8x64xf32>
    %5 = arith.addf %2, %4 : vector<8x64xf32>
    %cst_5 = arith.constant 0.000000e+00 : f32
    %6 = vector.broadcast %cst_5 : f32 to vector<8x64xf32>
    %7 = arith.maximumf %5, %6 : vector<8x64xf32>
    %8 = arith.truncf %7 : vector<8x64xf32> to vector<8x64xbf16>
    %c0_6 = arith.constant 0 : index
    %c0_7 = arith.constant 0 : index
    %9 = vector.load %arg4[%c0_6, %c0_7] : memref<64x64xbf16, #tpu.memory_space<vmem>>, vector<64x64xbf16>
    %cst_8 = arith.constant dense<0.000000e+00> : vector<8x64xf32>
    %10 = tpu.matmul %8, %9, %cst_8 {dimension_numbers = #tpu.dot_dimension_numbers<[1], [0], [0], [1], [0, 0, 1, 1], [], []>} : vector<8x64xbf16>, vector<64x64xbf16>, vector<8x64xf32> -> vector<8x64xf32>
    %c0_9 = arith.constant 0 : index
    %c0_10 = arith.constant 0 : index
    %11 = vector.load %arg5[%c0_9, %c0_10] : memref<1x64xf32, #tpu.memory_space<vmem>>, vector<1x64xf32>
    %12 = vector.broadcast %11 : vector<1x64xf32> to vector<8x64xf32>
    %13 = arith.addf %10, %12 : vector<8x64xf32>
    %cst_11 = arith.constant 0.000000e+00 : f32
    %14 = vector.broadcast %cst_11 : f32 to vector<8x64xf32>
    %15 = arith.maximumf %13, %14 : vector<8x64xf32>
    %16 = arith.truncf %15 : vector<8x64xf32> to vector<8x64xbf16>
    %c0_12 = arith.constant 0 : index
    %c0_13 = arith.constant 0 : index
    %17 = vector.load %arg6[%c0_12, %c0_13] : memref<64x32xbf16, #tpu.memory_space<vmem>>, vector<64x32xbf16>
    %cst_14 = arith.constant dense<0.000000e+00> : vector<8x32xf32>
    %18 = tpu.matmul %16, %17, %cst_14 {dimension_numbers = #tpu.dot_dimension_numbers<[1], [0], [0], [1], [0, 0, 1, 1], [], []>} : vector<8x64xbf16>, vector<64x32xbf16>, vector<8x32xf32> -> vector<8x32xf32>
    %c0_15 = arith.constant 0 : index
    %c0_16 = arith.constant 0 : index
    %19 = vector.load %arg7[%c0_15, %c0_16] : memref<1x32xf32, #tpu.memory_space<vmem>>, vector<1x32xf32>
    %20 = vector.broadcast %19 : vector<1x32xf32> to vector<8x32xf32>
    %21 = arith.addf %18, %20 : vector<8x32xf32>
    %cst_17 = arith.constant 0.000000e+00 : f32
    %22 = vector.broadcast %cst_17 : f32 to vector<8x32xf32>
    %23 = arith.maximumf %21, %22 : vector<8x32xf32>
    %24 = arith.truncf %23 : vector<8x32xf32> to vector<8x32xbf16>
    %c0_18 = arith.constant 0 : index
    %c0_19 = arith.constant 0 : index
    %25 = vector.load %arg8[%c0_18, %c0_19] : memref<32x128xbf16, #tpu.memory_space<vmem>>, vector<32x128xbf16>
    %cst_20 = arith.constant dense<0.000000e+00> : vector<8x128xf32>
    %26 = tpu.matmul %24, %25, %cst_20 {dimension_numbers = #tpu.dot_dimension_numbers<[1], [0], [0], [1], [0, 0, 1, 1], [], []>} : vector<8x32xbf16>, vector<32x128xbf16>, vector<8x128xf32> -> vector<8x128xf32>
    %c0_21 = arith.constant 0 : index
    %c0_22 = arith.constant 0 : index
    %27 = vector.load %arg9[%c0_21, %c0_22] : memref<1x128xf32, #tpu.memory_space<vmem>>, vector<1x128xf32>
    %28 = vector.broadcast %27 : vector<1x128xf32> to vector<8x128xf32>
    %29 = arith.addf %26, %28 : vector<8x128xf32>
    %c0_23 = arith.constant 0 : index
    %c0_24 = arith.constant 0 : index
    %30 = vector.load %arg12[%c0_23, %c0_24] : memref<8x128xf32, #tpu.memory_space<vmem>>, vector<8x128xf32>
    tpu.vector_store %arg12[%c0_23, %c0_24], %29 {strides = array<i32>} : memref<8x128xf32, #tpu.memory_space<vmem>>, vector<8x128xf32>,
    %31 = arith.mulf %29, %29 : vector<8x128xf32>
    %cst_25 = arith.constant dense<0.000000e+00> : vector<8xf32>
    %32 = vector.multi_reduction <add>, %31, %cst_25 [1] : vector<8x128xf32> to vector<8xf32>
    %33 = vector.shape_cast %32 : vector<8xf32> to vector<8x1xf32>
    %c0_26 = arith.constant 0 : index
    %c0_27 = arith.constant 0 : index
    %34 = vector.load %arg10[%c0_26, %c0_27] : memref<128x128xf32, #tpu.memory_space<vmem>>, vector<128x128xf32>
    %cst_28 = arith.constant dense<0.000000e+00> : vector<8x128xf32>
    %35 = tpu.matmul %29, %34, %cst_28 {dimension_numbers = #tpu.dot_dimension_numbers<[1], [0], [0], [1], [0, 0, 1, 1], [], []>} : vector<8x128xf32>, vector<128x128xf32>, vector<8x128xf32> -> vector<8x128xf32>
    %c0_29 = arith.constant 0 : index
    %c0_30 = arith.constant 0 : index
    %36 = vector.load %arg11[%c0_29, %c0_30] : memref<1x128xf32, #tpu.memory_space<vmem>>, vector<1x128xf32>
    %37 = vector.broadcast %33 : vector<8x1xf32> to vector<8x128xf32>
    %38 = vector.broadcast %36 : vector<1x128xf32> to vector<8x128xf32>
    %39 = arith.addf %37, %38 : vector<8x128xf32>
    %cst_31 = arith.constant 2.000000e+00 : f32
    %40 = vector.broadcast %cst_31 : f32 to vector<8x128xf32>
    %41 = arith.mulf %40, %35 : vector<8x128xf32>
    %42 = arith.subf %39, %41 : vector<8x128xf32>
    %cst_32 = arith.constant 0.000000e+00 : f32
    %43 = vector.broadcast %cst_32 : f32 to vector<8x128xf32>
    %44 = arith.maximumf %42, %43 : vector<8x128xf32>
    %cst_33 = arith.constant 1.000000e+00 : f32
    %45 = vector.broadcast %cst_33 : f32 to vector<8x128xf32>
    %46 = arith.mulf %44, %45 : vector<8x128xf32>
    %cst_34 = arith.constant 1.000000e+00 : f32
    %47 = vector.broadcast %cst_34 : f32 to vector<8x128xf32>
    %48 = arith.addf %47, %46 : vector<8x128xf32>
    %cst_35 = arith.constant 1.000000e+00 : f32
    %49 = vector.broadcast %cst_35 : f32 to vector<8x128xf32>
    %50 = arith.divf %49, %48 : vector<8x128xf32>
    %51 = tpu.iota {dimensions = array<i32: 1>} : vector<8x128xi32>
    %c4_i32 = arith.constant 4 : i32
    %52 = vector.broadcast %c4_i32 : i32 to vector<8x128xi32>
    %53 = arith.cmpi slt, %51, %52 : vector<8x128xi32>
    %cst_36 = arith.constant 0.000000e+00 : f32
    %54 = vector.broadcast %cst_36 : f32 to vector<8x128xf32>
    %55 = arith.select %53, %50, %54 : vector<8x128xi1>, vector<8x128xf32>
    %cst_37 = arith.constant dense<0.000000e+00> : vector<8xf32>
    %56 = vector.multi_reduction <add>, %55, %cst_37 [1] : vector<8x128xf32> to vector<8xf32>
    %57 = vector.shape_cast %56 : vector<8xf32> to vector<8x1xf32>
    %58 = vector.broadcast %57 : vector<8x1xf32> to vector<8x128xf32>
    %59 = arith.divf %55, %58 : vector<8x128xf32>
    %c0_38 = arith.constant 0 : index
    %c0_39 = arith.constant 0 : index
    %60 = vector.load %arg13[%c0_38, %c0_39] : memref<8x128xf32, #tpu.memory_space<vmem>>, vector<8x128xf32>
    tpu.vector_store %arg13[%c0_38, %c0_39], %59 {strides = array<i32>} : memref<8x128xf32, #tpu.memory_space<vmem>>, vector<8x128xf32>,
    return
  }
  func.func @transform_0(%arg0: i32) -> (i32, i32) {
    %c0_i32 = arith.constant 0 : i32
    %c0_i32_0 = arith.constant 0 : i32
    return %arg0, %c0_i32 : i32, i32
  }
  func.func @transform_1(%arg0: i32) -> (i32, i32) {
    %c0_i32 = arith.constant 0 : i32
    %c0_i32_0 = arith.constant 0 : i32
    %c0_i32_1 = arith.constant 0 : i32
    return %c0_i32, %c0_i32_0 : i32, i32
  }
  func.func @transform_2(%arg0: i32) -> (i32, i32) {
    %c0_i32 = arith.constant 0 : i32
    %c0_i32_0 = arith.constant 0 : i32
    %c0_i32_1 = arith.constant 0 : i32
    return %c0_i32, %c0_i32_0 : i32, i32
  }
  func.func @transform_3(%arg0: i32) -> (i32, i32) {
    %c0_i32 = arith.constant 0 : i32
    %c0_i32_0 = arith.constant 0 : i32
    %c0_i32_1 = arith.constant 0 : i32
    return %c0_i32, %c0_i32_0 : i32, i32
  }
  func.func @transform_4(%arg0: i32) -> (i32, i32) {
    %c0_i32 = arith.constant 0 : i32
    %c0_i32_0 = arith.constant 0 : i32
    %c0_i32_1 = arith.constant 0 : i32
    return %c0_i32, %c0_i32_0 : i32, i32
  }
  func.func @transform_5(%arg0: i32) -> (i32, i32) {
    %c0_i32 = arith.constant 0 : i32
    %c0_i32_0 = arith.constant 0 : i32
    %c0_i32_1 = arith.constant 0 : i32
    return %c0_i32, %c0_i32_0 : i32, i32
  }
  func.func @transform_6(%arg0: i32) -> (i32, i32) {
    %c0_i32 = arith.constant 0 : i32
    %c0_i32_0 = arith.constant 0 : i32
    %c0_i32_1 = arith.constant 0 : i32
    return %c0_i32, %c0_i32_0 : i32, i32
  }
  func.func @transform_7(%arg0: i32) -> (i32, i32) {
    %c0_i32 = arith.constant 0 : i32
    %c0_i32_0 = arith.constant 0 : i32
    %c0_i32_1 = arith.constant 0 : i32
    return %c0_i32, %c0_i32_0 : i32, i32
  }
  func.func @transform_8(%arg0: i32) -> (i32, i32) {
    %c0_i32 = arith.constant 0 : i32
    %c0_i32_0 = arith.constant 0 : i32
    %c0_i32_1 = arith.constant 0 : i32
    return %c0_i32, %c0_i32_0 : i32, i32
  }
  func.func @transform_9(%arg0: i32) -> (i32, i32) {
    %c0_i32 = arith.constant 0 : i32
    %c0_i32_0 = arith.constant 0 : i32
    %c0_i32_1 = arith.constant 0 : i32
    return %c0_i32, %c0_i32_0 : i32, i32
  }
  func.func @transform_10(%arg0: i32) -> (i32, i32) {
    %c0_i32 = arith.constant 0 : i32
    %c0_i32_0 = arith.constant 0 : i32
    %c0_i32_1 = arith.constant 0 : i32
    return %c0_i32, %c0_i32_0 : i32, i32
  }
  func.func @transform_11(%arg0: i32) -> (i32, i32) {
    %c0_i32 = arith.constant 0 : i32
    %c0_i32_0 = arith.constant 0 : i32
    return %arg0, %c0_i32 : i32, i32
  }
  func.func @transform_12(%arg0: i32) -> (i32, i32) {
    %c0_i32 = arith.constant 0 : i32
    %c0_i32_0 = arith.constant 0 : i32
    return %arg0, %c0_i32 : i32, i32
  }
}

</mosaic_0001>

<bundles_post_ra>
// kernel: scgc_trim_forward.1
= control target key start
LH: loop header
LB: loop body
LE: loop exit
PB: predicated region body
PF: predicated region fallthrough
CT: control target
= control target key end

     0   :  { %s611_s0 = inlined_call_operand.vmem [shape: bf16[8,32], index: 0, kind: input, shape index: {}]   ;;  %s612_s1 = inlined_call_operand.vmem [shape: bf16[32,64], index: 1, kind: input, shape index: {}]   ;;  %s613_s2 = inlined_call_operand.vmem [shape: f32[1,64], index: 2, kind: input, shape index: {}]   ;;  %s614_s3 = inlined_call_operand.vmem [shape: bf16[64,64], index: 3, kind: input, shape index: {}]   ;;  %s615_s4 = inlined_call_operand.vmem [shape: f32[1,64], index: 4, kind: input, shape index: {}]   ;;  %s616_s5 = inlined_call_operand.vmem [shape: bf16[64,32], index: 5, kind: input, shape index: {}]   ;;  %s617_s6 = inlined_call_operand.vmem [shape: f32[1,32], index: 6, kind: input, shape index: {}]   ;;  %s618_s7 = inlined_call_operand.vmem [shape: bf16[32,128], index: 7, kind: input, shape index: {}]   ;;  %s619_s8 = inlined_call_operand.vmem [shape: f32[1,128], index: 8, kind: input, shape index: {}]   ;;  %s620_s9 = inlined_call_operand.vmem [shape: f32[128,128], index: 9, kind: input, shape index: {}]   ;;  %s621_s10 = inlined_call_operand.vmem [shape: f32[1,128], index: 10, kind: input, shape index: {}]   ;;  %s622_s11 = inlined_call_operand.hbm [shape: f32[8,128], index: 11, kind: output, shape index: {0}]   ;;  %s623_s12 = inlined_call_operand.vmem [shape: f32[8,128], index: 12, kind: output, shape index: {1}]  }
   0x1   :  { %v386_v0 = vld [vmem:[%s612_s1 + $0x8] sm:$0xff]  ;;  %v385_v1 = vld [vmem:[%s612_s1] sm:$0xff]  ;;  %v390_v2 = vld [vmem:[%s614_s3 + $0x18] sm:$0xff] }
   0x2   :  { %73 = vmatpush.bf16.msra.mxu3 %v386_v0  ;;  %v389_v3 = vld [vmem:[%s614_s3 + $0x10] sm:$0xff]  ;;  %126 = vmatpush.bf16.msra.mxu1 %v390_v2 }
   0x3   :  { %18 = vsyncpa [#allocation3], 0  ;;  %v42_v4 = vld [vmem:[%s611_s0] sm:$0xf]  ;;  %vm63_vm0 = vcmask 261120   ;;  %v388_v5 = vld [vmem:[%s614_s3 + $0x8] sm:$0xff]  ;;  %v291_v61 = vlaneseq }
   0x4   :  { %v387_v6 = vld [vmem:[%s614_s3] sm:$0xff]  ;;  %v394_v7 = vld [vmem:[%s616_s5 + $0x18] sm:$0xff]  ;;  %v393_v8 = vld [vmem:[%s616_s5 + $0x10] sm:$0xff]  ;;  %vm118_vm1 = vcmask 523264   ;;  %s320_s19 = sshll.u32 %s622_s11, 4  ;;  %s321_s19 = int_to_ptr.hbm [resolvable:$true] %s320_s19 }
   0x5   :  { %180 = vmatpush.bf16.msra.mxu2 %v394_v7  ;;  %v398_v9 = vld [vmem:[%s613_s2] ss:$0 sm:$0xff]  ;;  %v392_v15 = vld [vmem:[%s616_s5 + $0x8] sm:$0xff]  ;;  %v246_v25 = vld [vmem:[%s620_s9 + $0x78] sm:$0xff] }
   0x6   :  { %74 = vmatpush.bf16.msra.mxu3 %v385_v1  ;;  %127 = vmatpush.bf16.msra.mxu1 %v389_v3  ;;  %v391_v16 = vld [vmem:[%s616_s5] sm:$0xff]  ;;  %v396_v17 = vld [vmem:[%s618_s7 + $0x8] sm:$0xff]  ;;  %v245_v26 = vld [vmem:[%s620_s9 + $0x70] sm:$0xff]  ;;  %v292_v1 = vand.u32 127, %v291_v61 }
   0x7   :  { %v395_v18 = vld [vmem:[%s618_s7] sm:$0xff]  ;;  %247 = vmatpush.msra.mxu0 %v246_v25  ;;  %v244_v27 = vld [vmem:[%s620_s9 + $0x68] sm:$0xff]  ;;  %v242_v29 = vld [vmem:[%s620_s9 + $0x58] sm:$0xff] }
   0x8   :  { %v399_v19 = vld [vmem:[%s615_s4] ss:$0 sm:$0xff]  ;;  %v241_v30 = vld [vmem:[%s620_s9 + $0x50] sm:$0xff]  ;;  %v240_v31 = vld [vmem:[%s620_s9 + $0x48] sm:$0xff]  ;;  %vm293_vm5 = vcmp.lt.s32.totalorder %v292_v1, 4 }
   0x9   :  { %341 = vmatmul.msk.bf16.vlgmr.msra.gmra.mxu3 %vm63_vm0, %v42_v4  ;;  %181 = vmatpush.bf16.msra.mxu2 %v393_v8  ;;  %v243_v28 = vld [vmem:[%s620_s9 + $0x60] sm:$0xff]  ;;  %v238_v33 = vld [vmem:[%s620_s9 + $0x38] sm:$0xff]  ;;  %v237_v34 = vld [vmem:[%s620_s9 + $0x30] sm:$0xff] }
   0xa   :  { %128 = vmatpush.bf16.msra.mxu1 %v388_v5  ;;  %220 = vmatpush.bf16.msrb.mxu3 %v396_v17  ;;  %v239_v32 = vld [vmem:[%s620_s9 + $0x40] sm:$0xff]  ;;  %v236_v35 = vld [vmem:[%s620_s9 + $0x28] sm:$0xff]  ;;  %v234_v38 = vld [vmem:[%s620_s9 + $0x18] sm:$0xff] }
   0xb   :  { %248 = vmatpush.msra.mxu0 %v245_v26  ;;  %v235_v36 = vld [vmem:[%s620_s9 + $0x20] sm:$0xff]  ;;  %v233_v40 = vld [vmem:[%s620_s9 + $0x10] sm:$0xff]  ;;  %v232_v45 = vld [vmem:[%s620_s9 + $0x8] sm:$0xff] }
   0xc   :  { %v400_v37 = vld [vmem:[%s617_s6] ss:$0 sm:$0xff] }
   0xd   :  { %182 = vmatpush.bf16.msra.mxu2 %v392_v15  ;;  %249 = vmatpush.msra.mxu0 %v244_v27  ;;  %v231_v46 = vld [vmem:[%s620_s9] sm:$0xff] }
   0xe   :  { %129 = vmatpush.bf16.msra.mxu1 %v387_v6  ;;  %221 = vmatpush.bf16.msrb.mxu3 %v395_v18  ;;  %v401_v47 = vld [vmem:[%s619_s8] ss:$0 sm:$0xff]  ;;  %s433_s8 = smov [#allocation2]  }
   0xf   :  { %250 = vmatpush.msra.mxu0 %v243_v28  ;;  %v402_v52 = vld [vmem:[%s621_s10] ss:$0 sm:$0xff]  ;;  %s318_s9 = sshll.u32 %s433_s8, 4  ;;  %s319_s9 = int_to_ptr.vmem [resolvable:$true] %s318_s9 }
  0x11   :  { %183 = vmatpush.bf16.msra.mxu2 %v391_v16  ;;  %251 = vmatpush.msra.mxu0 %v242_v29 }
  0x13   :  { %252 = vmatpush.msra.mxu0 %v241_v30 }
  0x15   :  { %253 = vmatpush.msra.mxu0 %v240_v31 }
  0x17   :  { %254 = vmatpush.msra.mxu0 %v239_v32 }
  0x19   :  { %255 = vmatpush.msra.mxu0 %v238_v33 }
  0x1b   :  { %256 = vmatpush.msra.mxu0 %v237_v34 }
  0x1d   :  { %257 = vmatpush.msra.mxu0 %v236_v35 }
  0x1f   :  { %258 = vmatpush.msra.mxu0 %v235_v36 }
  0x21   :  { %259 = vmatpush.msra.mxu0 %v234_v38 }
  0x23   :  { %260 = vmatpush.msra.mxu0 %v233_v40 }
  0x25   :  { %261 = vmatpush.msra.mxu0 %v232_v45 }
  0x27   :  { %262 = vmatpush.msra.mxu0 %v231_v46 }
  0x8c   :  { %v76_v10 = vpop.f32.mrf.mxu3 }
  0x8d   :  { %v77_v11 = vadd.f32 %v398_v9, %v76_v10 }
  0x8f   :  { %v80_v12 = vmax.f32 %v77_v11, 0.0 }
  0x91   :  { %v81_v13 = vpack.c.bf16 %v80_v12, %v80_v12 }
  0x93   :  { %358 = vmatmul.msk.bf16.vlgmr.msra.gmra.mxu1 %vm118_vm1, %v81_v13 }
  0x94   :  { %v78_v14 = vpop.f32.mrf.mxu3 }
 0x110   :  { %v131_v20 = vpop.f32.mrf.mxu1 }
 0x111   :  { %v132_v21 = vadd.f32 %v399_v19, %v131_v20 }
 0x113   :  { %v135_v22 = vmax.f32 %v132_v21, 0.0 }
 0x115   :  { %v136_v23 = vpack.c.bf16 %v135_v22, %v135_v22 }
 0x117   :  { %375 = vmatmul.msk.bf16.vlgmr.msra.gmra.mxu2 %vm118_vm1, %v136_v23 }
 0x118   :  { %v133_v24 = vpop.f32.mrf.mxu1 }
 0x19a   :  { %v185_v39 = vpop.f32.mrf.mxu2 }
 0x19b   :  { %v186_v41 = vadd.f32 %v400_v37, %v185_v39 }
 0x19d   :  { %v189_v42 = vmax.f32 %v186_v41, 0.0 }
 0x19f   :  { %v190_v43 = vpack.c.bf16 %v189_v42, %v189_v42 }
 0x1a1   :  { %384 = vmatmul.msk.bf16.vlgmr.msrb.gmra.mxu3 %vm63_vm0, %v190_v43 }
 0x1a2   :  { %v187_v44 = vpop.f32.mrf.mxu2 }
 0x224   :  { %v223_v48 = vpop.f32.mrf.mxu3 }
 0x225   :  { %v224_v49 = vadd.f32 %v401_v47, %v223_v48 }
 0x227   :  { %227 = vst [vmem:[#allocation2] sm:$0xff] %v224_v49  ;;  %263 = vmatmul.f32.vlgmr.msra.gmra.mxu0 %v224_v49  ;;  %v228_v50 = vmul.f32 %v224_v49, %v224_v49 }
 0x228   :  { %323 = dma.vmem_to_hbm [thread:$0]  %s319_s9, 128, %s321_s19, [#allocation3]  }
 0x229   :  { %229 = vadd.xlane.f32.xlu0 %v228_v50 }
 0x22c   :  { %v225_v51 = vpop.f32.mrf.mxu3 }
 0x29c   :  { %v230_v53 = vpop.xlane.xlu0 %229 }
 0x29d   :  { %v271_v55 = vadd.f32 %v402_v52, %v230_v53 }
 0x2a4   :  { %v264_v54 = vpop.f32.mrf.mxu0 }
 0x2a5   :  { %v272_v56 = vmul.f32 2.0, %v264_v54 }
 0x2a7   :  { %v273_v57 = vsub.f32 %v271_v55, %v272_v56 }
 0x2a9   :  { %v274_v58 = vmax.f32 %v273_v57, 0.0 }
 0x2ab   :  { %v275_v59 = vadd.f32 1.0, %v274_v58 }
 0x2ad   :  { %403 = vrcp.f32 %v275_v59  ;;  %v287_v0 = vand.u32 2147483648, %v275_v59  ;;  %v285_v3 = vand.u32 2147483647, %v275_v59  ;;  %vm281_vm3 = vweird.f32 %v275_v59 }
 0x2af   :  { %v288_v5 = vor.u32 1.1754944e-38, %v287_v0  ;;  %vm286_vm6 = vcmp.eq.f32.partialorder %v285_v3, 8.507059e+37 }
 0x2b3   :  { %v404_v60 = vpop.eup %403 }
 0x2b4   :  { %v277_v62 = vmul.f32 %v404_v60, %v275_v59  ;;  %vm282_vm2 = vweird.f32 %v404_v60 }
 0x2b5   :  { %vm283_vm4 = vmor %vm281_vm3, %vm282_vm2 }
 0x2b6   :  { %v278_v63 = vsub.f32 1.0, %v277_v62 }
 0x2b8   :  { %v279_v2 = vmul.f32 %v404_v60, %v278_v63 }
 0x2ba   :  { %v280_v4 = vadd.f32 %v404_v60, %v279_v2 }
 0x2bc   :  { %v284_v6 = vsel %vm283_vm4, %v404_v60, %v280_v4 }
 0x2bd   :  { %v289_v7 = vsel %vm286_vm6, %v288_v5, %v284_v6 }
 0x2be   :  { %v294_v8 = vsel %vm293_vm5, %v289_v7, 0.0 }
 0x2bf   :  { %295 = vadd.xlane.f32.xlu0 %v294_v8 }
 0x332   :  { %v296_v9 = vpop.xlane.xlu0 %295 }
 0x333   :  { %405 = vrcp.f32 %v296_v9  ;;  %v308_v13 = vand.u32 2147483648, %v296_v9  ;;  %v306_v15 = vand.u32 2147483647, %v296_v9  ;;  %vm302_vm8 = vweird.f32 %v296_v9 }
 0x335   :  { %v309_v17 = vor.u32 1.1754944e-38, %v308_v13  ;;  %vm307_vm10 = vcmp.eq.f32.partialorder %v306_v15, 8.507059e+37 }
 0x339   :  { %v406_v10 = vpop.eup %405 }
 0x33a   :  { %v298_v11 = vmul.f32 %v406_v10, %v296_v9  ;;  %vm303_vm7 = vweird.f32 %v406_v10 }
 0x33b   :  { %vm304_vm9 = vmor %vm302_vm8, %vm303_vm7 }
 0x33c   :  { %v299_v12 = vsub.f32 1.0, %v298_v11 }
 0x33e   :  { %v300_v14 = vmul.f32 %v406_v10, %v299_v12 }
 0x340   :  { %v301_v16 = vadd.f32 %v406_v10, %v300_v14 }
 0x342   :  { %v305_v18 = vsel %vm304_vm9, %v406_v10, %v301_v16 }
 0x343   :  { %v310_v19 = vsel %vm307_vm10, %v309_v17, %v305_v18 }
 0x344   :  { %v311_v20 = vmul.f32 %v310_v19, %v294_v8 }
 0x346   :  { %312 = vst [vmem:[%s623_s12] sm:$0xff] %v311_v20 }
 0x347   :  { %431 = dma.done.wait [#allocation3], 128  }
 0x348   :  { %432 = vsyncadd [#allocation3], 4294967168 }
 0x349   :  { %332 = vsyncpa [#allocation3], 1 }

</bundles_post_ra>
